<compile_context>
chip_gen: v7x
topology: tpu7x:2x2x1
jax: 0.10.0
libtpu: 0.0.40
codegen_flags: <defaults>
</compile_context>

<pallas_src>
import functools

import jax
import jax.numpy as jnp
from jax.experimental import pallas as pl
from jax.experimental.pallas import tpu as pltpu


NUM_SPLITS = 2       # leading "parallel" grid axis (v7x has 2 TensorCores)
SUBLANES = 8


def _round_up(x, m):
    return ((x + m - 1) // m) * m


def _choose_tb(n, c, budget_bytes=8 << 20):
    """Pick the batch-tile size from a conservative VMEM budget.

    Per grid step we hold: 2 inputs x 2 pipeline buffers x (tb, C) f32 plus a
    (tb, C) f32 accumulator scratch -> 5 * tb * C * 4 bytes.  8 MiB keeps us
    well under the default scoped VMEM limit on v5e (16 MiB) and v7x (32 MiB).
    """
    per_row = 5 * c * 4
    tb = budget_bytes // per_row
    tb = max(8, min(tb, 2048))
    tb = (tb // 8) * 8
    # No point making a tile larger than one split's worth of (padded) rows.
    rows_per_split = _round_up(pl.cdiv(_round_up(n, 8), NUM_SPLITS), 8)
    tb = min(tb, rows_per_split)
    return max(tb, 8)
    # TODO(synk): for very large C, tile C as an extra grid axis instead of
    # shrinking tb below a useful size.


def _focal_loss_kernel(x_ref, t_ref, out_ref, acc_ref, *,
                       alpha, gamma, tb, n_total, needs_mask):
    j = pl.program_id(1)

    @pl.when(j == 0)
    def _():
        acc_ref[...] = jnp.zeros_like(acc_ref)

    x = x_ref[...].astype(jnp.float32)
    t = t_ref[...].astype(jnp.float32)

    # One shared exp(-|x|) drives both sigmoid and the numerically-stable BCE
    # term: one EUP exp + one EUP log + one divide per element.
    e = jnp.exp(-jnp.abs(x))
    p = jnp.where(x >= 0.0, 1.0, e) / (1.0 + e)            # sigmoid(x)
    ce = jnp.maximum(x, 0.0) - x * t + jnp.log1p(e)        # BCE-with-logits

    # Focal modulation.
    p_t = p * t + (1.0 - p) * (1.0 - t)
    omt = 1.0 - p_t
    g = float(gamma)
    if g == 0.0:
        mod = jnp.ones_like(omt)
    elif g.is_integer() and g > 0:
        # Strength-reduce pow -> repeated VPU multiplies (gamma=2 -> one vmul).
        mod = omt
        for _ in range(int(g) - 1):
            mod = mod * omt
    else:
        # Clamp avoids NaN from pow when rounding makes (1 - p_t) < 0.
        mod = jnp.maximum(omt, 0.0) ** g
    loss = ce * mod

    if alpha >= 0:
        alpha_t = alpha * t + (1.0 - alpha) * (1.0 - t)
        loss = alpha_t * loss

    if needs_mask:
        # Zero contributions from padded rows (ragged batch handling).
        tile_idx = pl.program_id(0) * pl.num_programs(1) + j
        rows = tile_idx * tb + jax.lax.broadcasted_iota(jnp.int32, (tb, 1), 0)
        loss = jnp.where(rows < n_total, loss, 0.0)

    # vreg-shaped accumulation: pure elementwise VPU adds in the hot loop.
    acc_ref[...] += loss

    @pl.when(j == pl.num_programs(1) - 1)
    def _():
        # Single deferred cross-lane/sublane reduce per split.
        partial = jnp.sum(acc_ref[...])
        out_ref[...] = jnp.full(out_ref.shape, partial, dtype=out_ref.dtype)


def sigmoid_focal_loss(inputs, targets, alpha=0.25, gamma=2):
    """inputs, targets: (N, C) float. Returns scalar float32 loss."""
    N, C = inputs.shape
    assert targets.shape == (N, C)

    tb = _choose_tb(N, C)
    tiles_total = pl.cdiv(N, tb)
    tiles_per_split = pl.cdiv(tiles_total, NUM_SPLITS)
    n_pad = NUM_SPLITS * tiles_per_split * tb
    needs_mask = n_pad != N
    if needs_mask:
        pad = ((0, n_pad - N), (0, 0))
        inputs = jnp.pad(inputs, pad)
        targets = jnp.pad(targets, pad)

    kernel = functools.partial(
        _focal_loss_kernel,
        alpha=float(alpha), gamma=gamma, tb=tb, n_total=N, needs_mask=needs_mask,
    )

    T = tiles_per_split
    partials = pl.pallas_call(
        kernel,
        out_shape=jax.ShapeDtypeStruct((NUM_SPLITS * SUBLANES, 1), jnp.float32),
        grid_spec=pltpu.PrefetchScalarGridSpec(
            num_scalar_prefetch=0,
            grid=(NUM_SPLITS, T),
            in_specs=[
                pl.BlockSpec((tb, C), lambda s, j: (s * T + j, 0)),
                pl.BlockSpec((tb, C), lambda s, j: (s * T + j, 0)),
            ],
            # Each split writes its own (8, 1) partial block.
            out_specs=pl.BlockSpec((SUBLANES, 1), lambda s, j: (s, 0)),
            scratch_shapes=[pltpu.VMEM((tb, C), jnp.float32)],
        ),
        compiler_params=pltpu.CompilerParams(
            # Split axis shards across TensorCores (v7x); accumulation axis is
            # sequential.  Raise scoped VMEM (helps v5e's 16 MiB default) while
            # staying well under v7x's 64 MiB physical VMEM.
            dimension_semantics=("parallel", "arbitrary"),
            vmem_limit_bytes=32 << 20,
        ),
    )(inputs, targets)

    # One partial per split (broadcast over 8 sublanes): sum, then mean over N.
    total = partials[::SUBLANES, 0].sum()
    return total / jnp.float32(N)


def _reference(inputs, targets, alpha=0.25, gamma=2):
    p = jax.nn.sigmoid(inputs)
    ce = jnp.maximum(inputs, 0.0) - inputs * targets + jnp.log1p(
        jnp.exp(-jnp.abs(inputs))
    )
    p_t = p * targets + (1 - p) * (1 - targets)
    loss = ce * (1 - p_t) ** gamma
    if alpha >= 0:
        alpha_t = alpha * targets + (1 - alpha) * (1 - targets)
        loss = alpha_t * loss
    return loss.sum(axis=1).mean()


if __name__ == "__main__":
    key = jax.random.PRNGKey(0)
    k1, k2 = jax.random.split(key)

    # Small shapes; N=13 deliberately exercises the ragged-tail masking path.
    N, C = 13, 32
    inputs = jax.random.normal(k1, (N, C), dtype=jnp.float32) * 2.0
    targets = jax.random.bernoulli(k2, p=0.3, shape=(N, C)).astype(jnp.float32)

    out = sigmoid_focal_loss(inputs, targets, alpha=0.25, gamma=2)
    out = jax.block_until_ready(out)

    ref = _reference(inputs, targets, alpha=0.25, gamma=2)
    assert jnp.allclose(out, ref, rtol=1e-5, atol=1e-5), (out, ref)

    print("KERNEL_OK")
</pallas_src>

<mosaic_0001>
module attributes {stable_mosaic.version = 11 : i64} {
  func.func @_focal_loss_kernel(%arg0: i32, %arg1: i32, %arg2: memref<8x32xf32, #tpu.memory_space<vmem>>, %arg3: memref<8x32xf32, #tpu.memory_space<vmem>>, %arg4: memref<8x1xf32, #tpu.memory_space<vmem>>, %arg5: memref<8x32xf32, #tpu.memory_space<vmem>>) attributes {dimension_semantics = [#tpu.dimension_semantics<parallel>, #tpu.dimension_semantics<arbitrary>], iteration_bounds = array<i64: 2, 1>, scalar_prefetch = 0 : i64, scratch_operands = 1 : i64, tpu.core_type = #tpu.core_type<tc>, window_params = [{transform_indices = @transform_0, window_bounds = array<i64: 8, 32>}, {transform_indices = @transform_1, window_bounds = array<i64: 8, 32>}, {transform_indices = @transform_2, window_bounds = array<i64: 8, 1>}]} {
    %c0_i32 = arith.constant 0 : i32
    %0 = arith.cmpi eq, %arg1, %c0_i32 : i32
    %1 = arith.extui %0 : i1 to i32
    %c0_i32_0 = arith.constant 0 : i32
    %2 = arith.cmpi ne, %1, %c0_i32_0 : i32
    scf.if %2 {
      %cst_21 = arith.constant 0.000000e+00 : f32
      %59 = vector.broadcast %cst_21 : f32 to vector<8x32xf32>
      %c0_22 = arith.constant 0 : index
      %c0_23 = arith.constant 0 : index
      %60 = vector.load %arg5[%c0_22, %c0_23] : memref<8x32xf32, #tpu.memory_space<vmem>>, vector<8x32xf32>
      tpu.vector_store %arg5[%c0_22, %c0_23], %59 {strides = array<i32>} : memref<8x32xf32, #tpu.memory_space<vmem>>, vector<8x32xf32>,
    } else {
    }
    %c0 = arith.constant 0 : index
    %c0_1 = arith.constant 0 : index
    %3 = vector.load %arg2[%c0, %c0_1] : memref<8x32xf32, #tpu.memory_space<vmem>>, vector<8x32xf32>
    %c0_2 = arith.constant 0 : index
    %c0_3 = arith.constant 0 : index
    %4 = vector.load %arg3[%c0_2, %c0_3] : memref<8x32xf32, #tpu.memory_space<vmem>>, vector<8x32xf32>
    %5 = math.absf %3 : vector<8x32xf32>
    %cst = arith.constant 0.000000e+00 : f32
    %6 = vector.broadcast %cst : f32 to vector<8x32xf32>
    %7 = arith.subf %6, %5 : vector<8x32xf32>
    %8 = math.exp %7 : vector<8x32xf32>
    %cst_4 = arith.constant 0.000000e+00 : f32
    %9 = vector.broadcast %cst_4 : f32 to vector<8x32xf32>
    %10 = arith.cmpf oge, %3, %9 : vector<8x32xf32>
    %cst_5 = arith.constant 1.000000e+00 : f32
    %11 = vector.broadcast %cst_5 : f32 to vector<8x32xf32>
    %12 = arith.select %10, %11, %8 : vector<8x32xi1>, vector<8x32xf32>
    %cst_6 = arith.constant 1.000000e+00 : f32
    %13 = vector.broadcast %cst_6 : f32 to vector<8x32xf32>
    %14 = arith.addf %13, %8 : vector<8x32xf32>
    %15 = arith.divf %12, %14 : vector<8x32xf32>
    %cst_7 = arith.constant 0.000000e+00 : f32
    %16 = vector.broadcast %cst_7 : f32 to vector<8x32xf32>
    %17 = arith.maximumf %3, %16 : vector<8x32xf32>
    %18 = arith.mulf %3, %4 : vector<8x32xf32>
    %19 = arith.subf %17, %18 : vector<8x32xf32>
    %20 = math.log1p %8 : vector<8x32xf32>
    %21 = arith.addf %19, %20 : vector<8x32xf32>
    %22 = arith.mulf %15, %4 : vector<8x32xf32>
    %cst_8 = arith.constant 1.000000e+00 : f32
    %23 = vector.broadcast %cst_8 : f32 to vector<8x32xf32>
    %24 = arith.subf %23, %15 : vector<8x32xf32>
    %cst_9 = arith.constant 1.000000e+00 : f32
    %25 = vector.broadcast %cst_9 : f32 to vector<8x32xf32>
    %26 = arith.subf %25, %4 : vector<8x32xf32>
    %27 = arith.mulf %24, %26 : vector<8x32xf32>
    %28 = arith.addf %22, %27 : vector<8x32xf32>
    %cst_10 = arith.constant 1.000000e+00 : f32
    %29 = vector.broadcast %cst_10 : f32 to vector<8x32xf32>
    %30 = arith.subf %29, %28 : vector<8x32xf32>
    %31 = arith.mulf %30, %30 : vector<8x32xf32>
    %32 = arith.mulf %21, %31 : vector<8x32xf32>
    %cst_11 = arith.constant 2.500000e-01 : f32
    %33 = vector.broadcast %cst_11 : f32 to vector<8x32xf32>
    %34 = arith.mulf %33, %4 : vector<8x32xf32>
    %cst_12 = arith.constant 1.000000e+00 : f32
    %35 = vector.broadcast %cst_12 : f32 to vector<8x32xf32>
    %36 = arith.subf %35, %4 : vector<8x32xf32>
    %cst_13 = arith.constant 7.500000e-01 : f32
    %37 = vector.broadcast %cst_13 : f32 to vector<8x32xf32>
    %38 = arith.mulf %37, %36 : vector<8x32xf32>
    %39 = arith.addf %34, %38 : vector<8x32xf32>
    %40 = arith.mulf %39, %32 : vector<8x32xf32>
    %c1_i32 = arith.constant 1 : i32
    %41 = arith.muli %arg0, %c1_i32 : i32
    %42 = arith.addi %41, %arg1 : i32
    %c8_i32 = arith.constant 8 : i32
    %43 = arith.muli %42, %c8_i32 : i32
    %44 = tpu.iota {dimensions = array<i32: 0>} : vector<8x1xi32>
    %45 = vector.broadcast %43 : i32 to vector<8x1xi32>
    %46 = arith.addi %45, %44 : vector<8x1xi32>
    %c13_i32 = arith.constant 13 : i32
    %47 = vector.broadcast %c13_i32 : i32 to vector<8x1xi32>
    %48 = arith.cmpi slt, %46, %47 : vector<8x1xi32>
    %cst_14 = arith.constant 0.000000e+00 : f32
    %49 = vector.shape_cast %48 : vector<8x1xi1> to vector<8x1xi1>
    %50 = vector.broadcast %49 : vector<8x1xi1> to vector<8x32xi1>
    %51 = vector.broadcast %cst_14 : f32 to vector<8x32xf32>
    %52 = arith.select %50, %40, %51 : vector<8x32xi1>, vector<8x32xf32>
    %c0_15 = arith.constant 0 : index
    %c0_16 = arith.constant 0 : index
    %53 = vector.load %arg5[%c0_15, %c0_16] : memref<8x32xf32, #tpu.memory_space<vmem>>, vector<8x32xf32>
    %54 = arith.addf %53, %52 : vector<8x32xf32>
    %c0_17 = arith.constant 0 : index
    %c0_18 = arith.constant 0 : index
    %55 = vector.load %arg5[%c0_17, %c0_18] : memref<8x32xf32, #tpu.memory_space<vmem>>, vector<8x32xf32>
    tpu.vector_store %arg5[%c0_17, %c0_18], %54 {strides = array<i32>} : memref<8x32xf32, #tpu.memory_space<vmem>>, vector<8x32xf32>,
    %c0_i32_19 = arith.constant 0 : i32
    %56 = arith.cmpi eq, %arg1, %c0_i32_19 : i32
    %57 = arith.extui %56 : i1 to i32
    %c0_i32_20 = arith.constant 0 : i32
    %58 = arith.cmpi ne, %57, %c0_i32_20 : i32
    scf.if %58 {
      %c0_21 = arith.constant 0 : index
      %c0_22 = arith.constant 0 : index
      %59 = vector.load %arg5[%c0_21, %c0_22] : memref<8x32xf32, #tpu.memory_space<vmem>>, vector<8x32xf32>
      %60 = vector.shape_cast %59 : vector<8x32xf32> to vector<1x8x32xf32>
      %cst_23 = arith.constant dense<0.000000e+00> : vector<1xf32>
      %61 = vector.multi_reduction <add>, %60, %cst_23 [1, 2] : vector<1x8x32xf32> to vector<1xf32>
      %62 = vector.shape_cast %61 : vector<1xf32> to vector<1x1x1xf32>
      %63 = vector.extract %62[0, 0, 0] : f32 from vector<1x1x1xf32>
      %64 = vector.broadcast %63 : f32 to vector<8x1xf32>
      %c0_24 = arith.constant 0 : index
      %c0_25 = arith.constant 0 : index
      %65 = vector.load %arg4[%c0_24, %c0_25] : memref<8x1xf32, #tpu.memory_space<vmem>>, vector<8x1xf32>
      tpu.vector_store %arg4[%c0_24, %c0_25], %64 {strides = array<i32>} : memref<8x1xf32, #tpu.memory_space<vmem>>, vector<8x1xf32>,
    } else {
    }
    return
  }
  func.func @transform_0(%arg0: i32, %arg1: i32) -> (i32, i32) {
    %c1_i32 = arith.constant 1 : i32
    %0 = arith.muli %arg0, %c1_i32 : i32
    %1 = arith.addi %0, %arg1 : i32
    %c0_i32 = arith.constant 0 : i32
    %c0_i32_0 = arith.constant 0 : i32
    return %1, %c0_i32 : i32, i32
  }
  func.func @transform_1(%arg0: i32, %arg1: i32) -> (i32, i32) {
    %c1_i32 = arith.constant 1 : i32
    %0 = arith.muli %arg0, %c1_i32 : i32
    %1 = arith.addi %0, %arg1 : i32
    %c0_i32 = arith.constant 0 : i32
    %c0_i32_0 = arith.constant 0 : i32
    return %1, %c0_i32 : i32, i32
  }
  func.func @transform_2(%arg0: i32, %arg1: i32) -> (i32, i32) {
    %c0_i32 = arith.constant 0 : i32
    %c0_i32_0 = arith.constant 0 : i32
    return %arg0, %c0_i32 : i32, i32
  }
}

</mosaic_0001>

<bundles_post_ra>
// kernel: tpu_custom_call.1
= control target key start
LH: loop header
LB: loop body
LE: loop exit
PB: predicated region body
PF: predicated region fallthrough
CT: control target
= control target key end

     0   :  { %7 = vsyncpa [#allocation4], 0  ;;  %s781_s0 = inlined_call_operand.hbm [shape: f32[16,32], index: 0, kind: input, shape index: {}]   ;;  %s782_s1 = inlined_call_operand.hbm [shape: f32[16,32], index: 1, kind: input, shape index: {}]   ;;  %s783_s2 = inlined_call_operand.vmem [shape: f32[16,1], index: 2, kind: output, shape index: {}]  }
   0x1   :  { %9 = vsyncpa [#allocation4 + $0x1], 0 }
   0x2   :  { %10 = vsyncpa [#allocation6], 0 }
   0x3   :  { %12 = vsyncpa [#allocation6 + $0x1], 0  ;;  %s605_s9 = smov 0   ;;  %s607_s10 = smov 0  }
   0x4   :  { %s609_s11 = smov 0   ;;  %s611_s12 = smov 0  }
   0x5   :  { %s613_s13 = smov 0   ;;  %s615_s14 = smov 0  }
   0x6 LB: > { %s387_s15 = sadd.s32 4294967295, %s585_s14   ;;  %s30_s16 = sadd.s32 1, %s581_s13  ;;  %s585_s14 = sphi %s615_s14, %s18_s14   ;;  %s581_s13 = sphi %s613_s13, %s797_s13   ;;  %s577_s12 = sphi %s611_s12, %s796_s12   ;;  %s573_s11 = sphi %s609_s11, %s795_s11   ;;  %s569_s10 = sphi %s607_s10, %s794_s10   ;;  %s565_s9 = sphi %s605_s9, %s793_s9  }
   0x7   : > { %p32_p0 = scmp.ge.s32.totalorder %s30_s16, 2  ;;  %s39_s17 = sadd.s32 1, %s573_s11 }
   0x8   : > { %p46_p1 = scmp.ne.s32.totalorder %s573_s11, %s569_s10  ;;  %p47_p2 = scmp.eq.s32.totalorder %s585_s14, 0 }
   0x9   : > { %s799_s16 = smov (%p32_p0, %s30_s16), 0  ;;  %p52_p4 = scmp.ne.s32.totalorder %s569_s10, %s565_s9 }
   0xa   : > { %p641_p3 = por %p47_p2, %p46_p1  ;;  %s36_s19 = ssub.s32 %s581_s13, %s799_s16 }
   0xb   : > { %p53_p5 = scmp.eq.s32.totalorder %s387_s15, 0  ;;  %p37_p6 = scmp.eq.s32.totalorder %s36_s19, 0 }
   0xc   : > { %p415_p8 = scmp.lt.s32.totalorder %s585_s14, 2  ;;  %s657_s22 = sand.u32 1, %s573_s11  }
   0xd   : > { %p648_p7 = por %p53_p5, %p52_p4  ;;  %s392_s23 = sshll.u32 %s581_s13, 7 }
   0xe   : > { %s654_s21 = scalar_select %p37_p6, %s573_s11, %s39_s17  }
   0xf   : > { %s786_s20 = scalar_select %p648_p7, 1, 0 }
  0x10   : > { %s391_s24 = sshll.u32 %s657_s22, 3  ;;  %s666_s27 = scalar_lea.hbm %s781_s0, %s392_s23 }
  0x11   : > { %s134_s28 = scalar_lea.vmem [#allocation3], %s391_s24  ;;  %p672_p9 = pnand %p415_p8, %p641_p3 }
  0x12   : > { %s142_s29 = sshll.u32 %s134_s28, 4  ;;  %s131_s3 = scalar_lea.sflag [#allocation4], %s657_s22  ;;  %s676_s29 = int_to_ptr.vmem [resolvable:$true] %s142_s29 }
  0x13   : > { %s471_s4 = scalar_lea.hbm %s666_s27, 128  ;;  %p473_p13 = pneg %p672_p9 }
  0x14   : > { %p472_p12 = scmp.ne.s32.totalorder %s666_s27, %s471_s4  ;;  %s476_s7 = scalar_lea.hbm %s781_s0, 256 }
  0x15   : > { %p477_p2 = scmp.lt.u32.totalorder %s666_s27, %s781_s0  ;;  %p478_p3 = scmp.lt.u32.totalorder %s476_s7, %s471_s4 }
  0x16   : > { %p474_p0 = pnand %p473_p13, %p472_p12  ;;  %p480_p5 = scmp.lt.u32.totalorder %s471_s4, %s666_s27 }
  0x17   : > { %p479_p4 = por %p478_p3, %p477_p2 }
  0x18   : > { %p475_p1 = pneg %p474_p0 }
  0x19   : > { %p481_p6 = por %p480_p5, %p479_p4 }
  0x1b   : > { %p482_p8 = pnand %p481_p6, %p475_p1 }
  0x1d   : > { %485 = shalt.err (!%p482_p8)
}
  0x1e   : > { %s486_s15 = scalar_lea.vmem %s676_s29, 128  ;;  %s587_s17 = smov [#allocation3]  }
  0x1f   : > { %p487_p12 = scmp.ne.s32.totalorder %s676_s29, %s486_s15  ;;  %s491_s18 = sshll.u32 %s587_s17, 4  ;;  %s492_s18 = int_to_ptr.vmem [resolvable:$false] %s491_s18 }
  0x20   : > { %s493_s19 = scalar_lea.vmem %s492_s18, 256  ;;  %p494_p11 = scmp.lt.s32.totalorder %s676_s29, %s492_s18 }
  0x21   : > { %p489_p0 = pnand %p487_p12, %p473_p13  ;;  %p495_p2 = scmp.lt.s32.totalorder %s493_s19, %s486_s15 }
  0x23   : > { %p490_p10 = pneg %p489_p0  ;;  %p496_p3 = por %p495_p2, %p494_p11 }
  0x25   : > { %p497_p4 = pnand %p496_p3, %p490_p10 }
  0x27   : > { %500 = shalt.err (!%p497_p4)
}
  0x28   : > { %411 = dma.hbm_to_vmem [thread:$0]  (!%p672_p9), %s666_s27, 128, %s676_s29, %s131_s3  }
  0x29   : > { %p788_p1 = scmp.lt.s32.totalorder %s585_s14, 3  ;;  %p789_p5 = scmp.ge.s32.totalorder %s585_s14, 1 }
  0x2a   : > { %s719_s4 = scalar_lea.hbm %s782_s1, %s392_s23  ;;  %s153_s5 = scalar_lea.vmem [#allocation5], %s391_s24 }
  0x2b   : > { %p710_p6 = pnand %p789_p5, %p788_p1  ;;  %s161_s6 = sshll.u32 %s153_s5, 4  ;;  %s162_s6 = int_to_ptr.vmem [resolvable:$true] %s161_s6 }
  0x2c   : > { %s150_s27 = scalar_lea.sflag [#allocation6], %s657_s22  ;;  %s501_s29 = scalar_lea.hbm %s719_s4, 128 }
  0x2d   : > { %s790_s25 = scalar_select %p710_p6, 1, 0 }
  0x2e   : > { %p502_p10 = scmp.ne.s32.totalorder %s719_s4, %s501_s29  ;;  %s506_s23 = scalar_lea.hbm %s782_s1, 256 }
  0x2f   : > { %p507_p12 = scmp.lt.u32.totalorder %s719_s4, %s782_s1  ;;  %p508_p0 = scmp.lt.u32.totalorder %s506_s23, %s501_s29 }
  0x30   : > { %p504_p11 = pnand %p502_p10, %p473_p13  ;;  %p510_p3 = scmp.lt.u32.totalorder %s501_s29, %s719_s4 }
  0x31   : > { %p509_p2 = por %p508_p0, %p507_p12 }
  0x32   : > { %p505_p8 = pneg %p504_p11 }
  0x33   : > { %p511_p4 = por %p510_p3, %p509_p2 }
  0x35   : > { %p512_p1 = pnand %p511_p4, %p505_p8 }
  0x37   : > { %515 = shalt.err (!%p512_p1)
}
  0x38   : > { %s516_s22 = scalar_lea.vmem %s162_s6, 128  ;;  %s588_s24 = smov [#allocation5]  }
  0x39   : > { %p517_p5 = scmp.ne.s32.totalorder %s162_s6, %s516_s22  ;;  %s521_s15 = sshll.u32 %s588_s24, 4  ;;  %s522_s15 = int_to_ptr.vmem [resolvable:$false] %s521_s15 }
  0x3a   : > { %s523_s17 = scalar_lea.vmem %s522_s15, 256  ;;  %p524_p7 = scmp.lt.s32.totalorder %s162_s6, %s522_s15 }
  0x3b   : > { %p519_p10 = pnand %p517_p5, %p473_p13  ;;  %p525_p6 = scmp.lt.s32.totalorder %s523_s17, %s516_s22 }
  0x3d   : > { %p520_p11 = pneg %p519_p10  ;;  %p526_p0 = por %p525_p6, %p524_p7 }
  0x3f   : > { %p527_p12 = pnand %p526_p0, %p520_p11 }
  0x41   : > { %530 = shalt.err (!%p527_p12)
}
  0x42   : > { %414 = dma.hbm_to_vmem [thread:$0]  (!%p672_p9), %s719_s4, 128, %s162_s6, %s150_s27  }
  0x43   : > { %p791_p8 = scmp.ne.s32.totalorder %s790_s25, 0 }
  0x44   : > { %s172_s18 = sand.u32 (!%p791_p8), 1, %s569_s10   ;;  %p792_p13 = scmp.ne.s32.totalorder (!%p791_p8), %s786_s20, 0 }
  0x45   : > { %170 = sbr.rel (%p791_p8) target bundleno = 344 (0x158), region = 28  ;;  %s396_s19 = sshll.u32 (!%p791_p8), %s172_s18, 3 }
  0x46   : > { %s173_s26 = scalar_lea.sflag (!%p791_p8), [#allocation4], %s172_s18  ;;  %s176_s28 = scalar_lea.vmem (!%p791_p8), [#allocation3], %s396_s19 }
  0x4c   : > { %556 = dma.done.wait (%p792_p13), %s173_s26, 128  }
  0x4d   : > { %558 = vsyncadd (%p792_p13), %s173_s26, 4294967168  ;;  %s182_s5 = scalar_lea.sflag [#allocation6], %s172_s18  ;;  %s185_s29 = scalar_lea.vmem [#allocation5], %s396_s19 }
  0x4e   : > { %560 = dma.done.wait (%p792_p13), %s182_s5, 128  }
  0x4f   : > { %562 = vsyncadd (%p792_p13), %s182_s5, 4294967168  ;;  %vm220_vm0 = vcmask 261120   ;;  %v589_v0 = vmov 0.0   ;;  %v222_v1 = vld [vmem:[%s176_s28] sm:$0xff]  ;;  %v223_v8 = vld [vmem:[%s185_s29] sm:$0xff]  ;;  %v260_v20 = vlaneseq  ;;  %s399_s20 = sshll.u32 %s577_s12, 3 }
  0x50   : > { %221 = vst.msk [vmem:[#allocation2] sm:$0xff] %vm220_vm0, %v589_v0  ;;  %v224_v2 = vand.u32 2147483647, %v222_v1  ;;  %vm228_vm1 = vcmp.ge.f32.partialorder %v222_v1, 0.0  ;;  %v233_v15 = vmax.f32 %v222_v1, 0.0  ;;  %v234_v16 = vmul.f32 %v223_v8, %v222_v1  ;;  %p212_p7 = scmp.lt.s32.totalorder %s577_s12, 1 }
  0x51   : > { %v248_v17 = vsub.f32 1.0, %v223_v8  ;;  %v261_v26 = vshrl.u32 %v260_v20, 7  ;;  %v254_v28 = vmul.f32 0.25, %v223_v8  ;;  %v262_v30 = vstv %s399_s20 }
  0x52   : > { %v225_v3 = vsub.f32 0.0, %v224_v2  ;;  %v235_v23 = vsub.f32 %v233_v15, %v234_v16  ;;  %s801_s12 = smov (!%p212_p7, %s577_s12), 1  ;;  %vm287_vm4 = vcmask 7168  }
  0x53   : > { %v255_v29 = vmul.f32 0.75, %v248_v17  ;;  %v263_v33 = vadd.s32 %v262_v30, %v261_v26  ;;  %s398_s30 = sshll.u32 %s801_s12, 3 }
  0x54   : > { %v226_v4 = vmul.f32 1.442695, %v225_v3  ;;  %s215_s6 = scalar_lea.vmem %s783_s2, %s398_s30 }
  0x55   : > { %v256_v35 = vadd.f32 %v255_v29, %v254_v28  ;;  %vm264_vm3 = vcmp.lt.s32.totalorder %v263_v33, 13 }
  0x56   : > { %465 = vpow2.f32 %v226_v4 }
  0x57   : > { %v268_v38 = vld [vmem:[#allocation2] sm:$0xff] }
  0x60   : > { %v466_v5 = vpop.eup %465 }
  0x61   : > { %v230_v6 = vadd.f32 1.0, %v466_v5  ;;  %v239_v7 = vmul.f32 -0.5, %v466_v5  ;;  %v229_v9 = vsel %vm228_vm1, 1.0, %v466_v5  ;;  %v242_v11 = vand.u32 2147483647, %v466_v5 }
  0x63   : > { %467 = vrcp.f32 %v230_v6  ;;  %v240_v10 = vadd.f32 1.0, %v239_v7  ;;  %vm243_vm2 = vcmp.lt.f32.partialorder %v242_v11, 0.0004427343 }
  0x64   : > { %469 = vlog2.f32 %v230_v6 }
  0x65   : > { %v241_v19 = vmul.f32 %v466_v5, %v240_v10 }
  0x6d   : > { %v468_v12 = vpop.eup %467 }
  0x6e   : > { %v470_v13 = vpop.eup %469  ;;  %v232_v14 = vmul.f32 %v468_v12, %v229_v9 }
  0x6f   : > { %v238_v18 = vmul.f32 0.6931472, %v470_v13 }
  0x70   : > { %v246_v21 = vmul.f32 %v232_v14, %v223_v8  ;;  %v247_v22 = vsub.f32 1.0, %v232_v14 }
  0x71   : > { %v244_v25 = vsel %vm243_vm2, %v241_v19, %v238_v18 }
  0x72   : > { %v249_v24 = vmul.f32 %v248_v17, %v247_v22  ;;  %v245_v31 = vadd.f32 %v244_v25, %v235_v23 }
  0x74   : > { %v250_v27 = vadd.f32 %v249_v24, %v246_v21 }
  0x76   : > { %v251_v32 = vsub.f32 1.0, %v250_v27 }
  0x78   : > { %v252_v34 = vmul.f32 %v251_v32, %v251_v32 }
  0x7a   : > { %v253_v36 = vmul.f32 %v252_v34, %v245_v31 }
  0x7c   : > { %v257_v37 = vmul.f32 %v256_v35, %v253_v36 }
  0x7e   : > { %v267_v39 = vsel %vm264_vm3, %v257_v37, 0.0 }
  0x7f   : > { %v269_v40 = vadd.f32 %v268_v38, %v267_v39 }
  0x81   : > { %271 = vst.msk [vmem:[#allocation2] sm:$0xff] %vm220_vm0, %v269_v40 }
  0x88   : > { %v275_v41 = vld [vmem:[#allocation2] sm:$0xff] }
  0x89   : > { %v276_v42 = vsel %vm220_vm0, %v275_v41, 0.0 }
  0x8a   : > { %277 = vadd.xlane.f32.xlu0 %v276_v42 }
 0x117   : > { %v278_v43 = vpop.xlane.xlu0 %277 }
 0x118   : > { %v279_v44 = vrot.slane %v278_v43, 4 }
 0x11a   : > { %v280_v45 = vadd.f32 %v279_v44, %v278_v43 }
 0x11c   : > { %v281_v46 = vrot.slane %v280_v45, 2 }
 0x11e   : > { %v282_v47 = vadd.f32 %v281_v46, %v280_v45 }
 0x120   : > { %v283_v48 = vrot.slane %v282_v47, 1 }
 0x122   : > { %v284_v49 = vadd.f32 %v283_v48, %v282_v47 }
 0x124   : > { %402 = vpush %v284_v49 }
 0x155   : > { %s403_s27 = spop %402 }
 0x156   : > { %v286_v50 = vstv %s403_s27 }
 0x157   : > { %288 = vst.msk [vmem:[%s215_s6] sm:$0xff] %vm287_vm4, %v286_v50 }
 0x158 PF: > { %s18_s14 = sadd.s32 1, %s585_s14   ;;  %s793_s9 = smov %s569_s10 }
 0x159   : > { %p15_p9 = scmp.ge.s32.totalorder %s18_s14, 4   ;;  %s794_s10 = smov %s573_s11 }
 0x15a   : > { %s795_s11 = smov %s654_s21  ;;  %s796_s12 = smov %s581_s13 }
 0x15b   : > { %s797_s13 = smov %s799_s16  ;;  %17 = sbr.rel (!%p15_p9) target bundleno = 6 (0x6), region = 89 }
 0x162   :  { %308 = vsyncpa [#allocation4], 1 }
 0x163   :  { %310 = vsyncpa [#allocation4 + $0x1], 1 }
 0x164   :  { %311 = vsyncpa [#allocation6], 1 }
 0x165   :  { %313 = vsyncpa [#allocation6 + $0x1], 1 }

</bundles_post_ra>
